<compile_context>
chip_gen: v7x
topology: tpu7x:2x2x1
jax: 0.10.0
libtpu: 0.0.40
codegen_flags: <defaults>
</compile_context>

<pallas_src>
import functools

import jax
import jax.numpy as jnp
from jax.experimental import pallas as pl
from jax.experimental.pallas import tpu as pltpu


LANES = 1024          # lane-dense last dim (large multiple of 128)
ROW_ALIGN = 32        # row padding so int8 sublane packing / (8,128) rule hold
MAX_BLOCK_ROWS = 512  # 512x1024 f32 tile = 2 MiB/array -> VMEM-safe on v7x too


def _fsu_sign_init_kernel(x_ref, sign_ref, acc_ref, *, acc_init, buf_max, buf_half):
    # First call: accumulator starts at the module's scalar init value.
    x = x_ref[...].astype(jnp.float32)                       # bits {0,1} -> f32 (VPU)
    acc_new = jnp.clip(acc_init + (x * 2.0 - 1.0), 0.0, buf_max)
    sign_ref[...] = (acc_new < buf_half).astype(jnp.float32)  # 1 = negative, 0 = non-neg
    acc_ref[...] = acc_new


def _fsu_sign_stateful_kernel(x_ref, acc_in_ref, sign_ref, acc_out_ref, *, buf_max, buf_half):
    # Subsequent calls: accumulator carried per element (aliased in place).
    x = x_ref[...].astype(jnp.float32)
    acc_new = jnp.clip(acc_in_ref[...] + (x * 2.0 - 1.0), 0.0, buf_max)
    sign_ref[...] = (acc_new < buf_half).astype(jnp.float32)
    acc_out_ref[...] = acc_new


def _pad_to_lane_dense(x_flat):
    """Pad a flat array and reshape to (rows, LANES) with rows % ROW_ALIGN == 0."""
    total = x_flat.shape[0]
    rows = pl.cdiv(total, LANES)
    rows = pl.cdiv(rows, ROW_ALIGN) * ROW_ALIGN
    padded = rows * LANES
    if padded != total:
        x_flat = jnp.pad(x_flat, (0, padded - total))
    return x_flat.reshape(rows, LANES)


def fsu_sign_forward(x_nchw, acc_state=None, depth=3):
    """FSUSign forward (non-shiftreg branch).

    Args:
      x_nchw:    unary bipolar rate-coded bits in {0,1}; any numeric dtype
                 (pass int8/bool to get the bandwidth-friendly 1 B/elem path).
      acc_state: None for the first call (acc = 2**(depth-1) as in __init__),
                 or the (rows, LANES) float32 state returned by a previous call
                 (reproduces the stateful PyTorch Parameter across time steps).
      depth:     static buffer depth.

    Returns:
      sign:          float32, same shape as x (1 for negative, 0 for non-negative).
      acc_state_new: float32 (rows, LANES) padded accumulator state.
    """
    orig_shape = x_nchw.shape
    total = int(x_nchw.size)

    acc_init = float(2 ** (depth - 1))
    buf_max = float(2 ** depth - 1)
    buf_half = float(2 ** (depth - 1))

    # Keep the bits in their storage dtype; the kernel upcasts on the VPU.
    x2d = _pad_to_lane_dense(x_nchw.reshape(-1))
    rows = x2d.shape[0]
    block_rows = min(rows, MAX_BLOCK_ROWS)
    grid = (pl.cdiv(rows, block_rows),)

    tile_spec = pl.BlockSpec((block_rows, LANES), lambda i: (i, 0))
    out_shapes = (
        jax.ShapeDtypeStruct((rows, LANES), jnp.float32),  # sign
        jax.ShapeDtypeStruct((rows, LANES), jnp.float32),  # updated acc
    )
    cparams = pltpu.CompilerParams(dimension_semantics=("parallel",))

    if acc_state is None:
        kernel = functools.partial(
            _fsu_sign_init_kernel,
            acc_init=acc_init, buf_max=buf_max, buf_half=buf_half)
        sign2d, acc2d = pl.pallas_call(
            kernel,
            out_shape=out_shapes,
            grid=grid,
            in_specs=[tile_spec],
            out_specs=(tile_spec, tile_spec),
            compiler_params=cparams,
        )(x2d)
    else:
        assert acc_state.shape == (rows, LANES) and acc_state.dtype == jnp.float32
        kernel = functools.partial(
            _fsu_sign_stateful_kernel, buf_max=buf_max, buf_half=buf_half)
        sign2d, acc2d = pl.pallas_call(
            kernel,
            out_shape=out_shapes,
            grid=grid,
            in_specs=[tile_spec, tile_spec],
            out_specs=(tile_spec, tile_spec),
            input_output_aliases={1: 1},   # acc updated in place (reuse HBM buffer)
            compiler_params=cparams,
        )(x2d, acc_state)

    sign = sign2d.reshape(-1)[:total].reshape(orig_shape)
    return sign, acc2d


if __name__ == "__main__":
    key = jax.random.PRNGKey(0)
    k1, k2 = jax.random.split(key)
    shape = (2, 4, 16, 16)
    depth = 3

    # Unary bipolar rate-coded bit streams for two consecutive time steps,
    # stored as int8 (narrow dtype -> 1 B/elem of HBM input traffic).
    x1 = jax.random.bernoulli(k1, p=0.5, shape=shape).astype(jnp.int8)
    x2 = jax.random.bernoulli(k2, p=0.5, shape=shape).astype(jnp.int8)

    # Step 1: acc starts at the module's init value 2**(depth-1).
    sign1, acc_state = fsu_sign_forward(x1, depth=depth)
    # Step 2: stateful update, accumulator carried over and aliased in place.
    sign2, acc_state = fsu_sign_forward(x2, acc_state=acc_state, depth=depth)
    sign1, sign2, acc_state = jax.block_until_ready((sign1, sign2, acc_state))

    # Pure-JAX reference of the PyTorch forward semantics.
    buf_max = float(2 ** depth - 1)
    buf_half = float(2 ** (depth - 1))
    x1f = x1.astype(jnp.float32)
    x2f = x2.astype(jnp.float32)
    acc_ref1 = jnp.clip(buf_half + (x1f * 2.0 - 1.0), 0.0, buf_max)
    sign_ref1 = (1 - (acc_ref1 >= buf_half).astype(jnp.int8)).astype(jnp.float32)
    acc_ref2 = jnp.clip(acc_ref1 + (x2f * 2.0 - 1.0), 0.0, buf_max)
    sign_ref2 = (1 - (acc_ref2 >= buf_half).astype(jnp.int8)).astype(jnp.float32)

    acc2_kernel = acc_state.reshape(-1)[: x1.size].reshape(shape)

    assert sign1.dtype == jnp.float32 and sign1.shape == shape
    assert sign2.dtype == jnp.float32 and sign2.shape == shape
    assert jnp.array_equal(sign1, sign_ref1)
    assert jnp.array_equal(sign2, sign_ref2)
    assert jnp.array_equal(acc2_kernel, acc_ref2)

    # TODO(synk): shiftreg=True branch (ShiftReg submodule) not implemented.
    print("KERNEL_OK")
</pallas_src>

<mosaic_0001>
module attributes {stable_mosaic.version = 11 : i64} {
  func.func @_fsu_sign_init_kernel(%arg0: i32, %arg1: memref<32x1024xi8, #tpu.memory_space<vmem>>, %arg2: memref<32x1024xf32, #tpu.memory_space<vmem>>, %arg3: memref<32x1024xf32, #tpu.memory_space<vmem>>) attributes {dimension_semantics = [#tpu.dimension_semantics<parallel>], iteration_bounds = array<i64: 1>, scalar_prefetch = 0 : i64, scratch_operands = 0 : i64, tpu.core_type = #tpu.core_type<tc>, window_params = [{transform_indices = @transform_0, window_bounds = array<i64: 32, 1024>}, {transform_indices = @transform_1, window_bounds = array<i64: 32, 1024>}, {transform_indices = @transform_2, window_bounds = array<i64: 32, 1024>}]} {
    %c0 = arith.constant 0 : index
    %c0_0 = arith.constant 0 : index
    %0 = vector.load %arg1[%c0, %c0_0] : memref<32x1024xi8, #tpu.memory_space<vmem>>, vector<32x1024xi8>
    %1 = arith.sitofp %0 : vector<32x1024xi8> to vector<32x1024xf32>
    %cst = arith.constant 2.000000e+00 : f32
    %2 = vector.broadcast %cst : f32 to vector<32x1024xf32>
    %3 = arith.mulf %1, %2 : vector<32x1024xf32>
    %cst_1 = arith.constant 1.000000e+00 : f32
    %4 = vector.broadcast %cst_1 : f32 to vector<32x1024xf32>
    %5 = arith.subf %3, %4 : vector<32x1024xf32>
    %cst_2 = arith.constant 4.000000e+00 : f32
    %6 = vector.broadcast %cst_2 : f32 to vector<32x1024xf32>
    %7 = arith.addf %6, %5 : vector<32x1024xf32>
    %cst_3 = arith.constant 0.000000e+00 : f32
    %cst_4 = arith.constant 7.000000e+00 : f32
    %8 = vector.broadcast %cst_3 : f32 to vector<32x1024xf32>
    %9 = arith.maximumf %8, %7 : vector<32x1024xf32>
    %10 = vector.broadcast %cst_4 : f32 to vector<32x1024xf32>
    %11 = arith.minimumf %10, %9 : vector<32x1024xf32>
    %cst_5 = arith.constant 4.000000e+00 : f32
    %12 = vector.broadcast %cst_5 : f32 to vector<32x1024xf32>
    %13 = arith.cmpf olt, %11, %12 : vector<32x1024xf32>
    %14 = arith.extui %13 : vector<32x1024xi1> to vector<32x1024xi32>
    %15 = arith.sitofp %14 : vector<32x1024xi32> to vector<32x1024xf32>
    %c0_6 = arith.constant 0 : index
    %c0_7 = arith.constant 0 : index
    %16 = vector.load %arg2[%c0_6, %c0_7] : memref<32x1024xf32, #tpu.memory_space<vmem>>, vector<32x1024xf32>
    tpu.vector_store %arg2[%c0_6, %c0_7], %15 {strides = array<i32>} : memref<32x1024xf32, #tpu.memory_space<vmem>>, vector<32x1024xf32>,
    %c0_8 = arith.constant 0 : index
    %c0_9 = arith.constant 0 : index
    %17 = vector.load %arg3[%c0_8, %c0_9] : memref<32x1024xf32, #tpu.memory_space<vmem>>, vector<32x1024xf32>
    tpu.vector_store %arg3[%c0_8, %c0_9], %11 {strides = array<i32>} : memref<32x1024xf32, #tpu.memory_space<vmem>>, vector<32x1024xf32>,
    return
  }
  func.func @transform_0(%arg0: i32) -> (i32, i32) {
    %c0_i32 = arith.constant 0 : i32
    %c0_i32_0 = arith.constant 0 : i32
    return %arg0, %c0_i32 : i32, i32
  }
  func.func @transform_1(%arg0: i32) -> (i32, i32) {
    %c0_i32 = arith.constant 0 : i32
    %c0_i32_0 = arith.constant 0 : i32
    return %arg0, %c0_i32 : i32, i32
  }
  func.func @transform_2(%arg0: i32) -> (i32, i32) {
    %c0_i32 = arith.constant 0 : i32
    %c0_i32_0 = arith.constant 0 : i32
    return %arg0, %c0_i32 : i32, i32
  }
}

</mosaic_0001>

<bundles_post_ra>
// kernel: tpu_custom_call.1
= control target key start
LH: loop header
LB: loop body
LE: loop exit
PB: predicated region body
PF: predicated region fallthrough
CT: control target
= control target key end

     0   :  { %8 = vsyncpa [#allocation3], 0  ;;  %s739_s0 = inlined_call_operand.hbm [shape: s8[32,1024], index: 0, kind: input, shape index: {}]   ;;  %s740_s1 = inlined_call_operand.hbm [shape: f32[32,1024], index: 1, kind: output, shape index: {0}]   ;;  %s741_s2 = inlined_call_operand.hbm [shape: f32[32,1024], index: 2, kind: output, shape index: {1}]  }
   0x1   :  { %9 = vsyncpa [#allocation4], 0 }
   0x2   :  { %10 = vsyncpa [#allocation7], 0  ;;  %s591_s9 = smov [#allocation2]   ;;  %s519_s13 = scalar_lea.hbm %s739_s0, 1024 }
   0x3   :  { %s17_s10 = sshll.u32 %s591_s9, 4  ;;  %p520_p0 = scmp.ne.s32.totalorder %s739_s0, %s519_s13  ;;  %s18_s10 = int_to_ptr.vmem [resolvable:$true] %s17_s10 }
   0x4   :  { %p523_p1 = scmp.lt.u32.totalorder %s519_s13, %s739_s0 }
   0x6   :  { %p525_p2 = pnand %p523_p1, %p520_p0 }
   0x8   :  { %528 = shalt.err (!%p525_p2)
}
   0x9   :  { %s529_s18 = scalar_lea.vmem %s18_s10, 1024  ;;  %p534_p4 = scmp.lt.s32.totalorder %s18_s10, %s18_s10 }
   0xa   :  { %p530_p3 = scmp.ne.s32.totalorder %s18_s10, %s529_s18  ;;  %p535_p5 = scmp.lt.s32.totalorder %s529_s18, %s529_s18 }
   0xc   :  { %p536_p6 = por %p535_p5, %p534_p4 }
   0xe   :  { %p537_p7 = pnand %p536_p6, %p530_p3 }
  0x10   :  { %540 = shalt.err (!%p537_p7)
}
  0x11   :  { %20 = dma.hbm_to_vmem [thread:$0]  %s739_s0, 1024, %s18_s10, [#allocation3]  }
  0x12   :  { %585 = dma.done.wait [#allocation3], 1024  }
  0x13   :  { %586 = vsyncadd [#allocation3], 4294966272  ;;  %v624_v0 = vld [vmem:[#allocation2] sm:$0xff]  ;;  %v626_v1 = vld [vmem:[#allocation2 + $0x8] sm:$0xff]  ;;  %s593_s0 = smov [#allocation6]   ;;  %s594_s22 = smov [#allocation5]  }
  0x14   :  { %v628_v2 = vld [vmem:[#allocation2 + $0x10] sm:$0xff]  ;;  %v32_v3 = vunpack.c.0.s8 %v624_v0  ;;  %v33_v4 = vunpack.c.0.s8 %v626_v1  ;;  %v633_v6 = vld [vmem:[#allocation2 + $0x18] sm:$0xff]  ;;  %v635_v7 = vld [vmem:[#allocation2 + $0x20] sm:$0xff]  ;;  %v40_v9 = vunpack.c.1.s8 %v624_v0  ;;  %v41_v15 = vunpack.c.1.s8 %v626_v1  ;;  %s433_s21 = sshll.u32 %s593_s0, 4  ;;  %s421_s23 = sshll.u32 %s594_s22, 4  ;;  %s434_s21 = int_to_ptr.vmem [resolvable:$true] %s433_s21  ;;  %s707_s23 = int_to_ptr.vmem [resolvable:$true] %s421_s23 }
  0x15   :  { %v34_v5 = vunpack.c.0.s8 %v628_v2  ;;  %v637_v8 = vld [vmem:[#allocation2 + $0x28] sm:$0xff]  ;;  %v35_v10 = vunpack.c.0.s8 %v633_v6  ;;  %v36_v11 = vunpack.c.0.s8 %v635_v7  ;;  %v643_v13 = vld [vmem:[#allocation2 + $0x30] sm:$0xff]  ;;  %v645_v14 = vld [vmem:[#allocation2 + $0x38] sm:$0xff]  ;;  %s541_s24 = scalar_lea.vmem %s434_s21, 4096  ;;  %p546_p9 = scmp.lt.s32.totalorder %s434_s21, %s434_s21 }
  0x16   :  { %v37_v12 = vunpack.c.0.s8 %v637_v8  ;;  %v64_v16 = vcvt.s32.f32 %v32_v3  ;;  %v65_v17 = vcvt.s32.f32 %v33_v4  ;;  %v38_v19 = vunpack.c.0.s8 %v643_v13  ;;  %p542_p8 = scmp.ne.s32.totalorder %s434_s21, %s541_s24  ;;  %p547_p10 = scmp.lt.s32.totalorder %s541_s24, %s541_s24 }
  0x17   :  { %v66_v18 = vcvt.s32.f32 %v34_v5  ;;  %v67_v20 = vcvt.s32.f32 %v35_v10  ;;  %v68_v21 = vcvt.s32.f32 %v36_v11  ;;  %v39_v23 = vunpack.c.0.s8 %v645_v14 }
  0x18   :  { %v69_v22 = vcvt.s32.f32 %v37_v12  ;;  %v96_v24 = vmul.f32 2.0, %v64_v16  ;;  %v97_v25 = vmul.f32 2.0, %v65_v17  ;;  %v70_v27 = vcvt.s32.f32 %v38_v19  ;;  %p548_p11 = por %p547_p10, %p546_p9 }
  0x19   :  { %v98_v26 = vmul.f32 2.0, %v66_v18  ;;  %v99_v28 = vmul.f32 2.0, %v67_v20  ;;  %v100_v29 = vmul.f32 2.0, %v68_v21  ;;  %v71_v31 = vcvt.s32.f32 %v39_v23 }
  0x1a   :  { %v101_v30 = vmul.f32 2.0, %v69_v22  ;;  %v449_v32 = vadd.f32 -1.0, %v96_v24  ;;  %v450_v33 = vadd.f32 -1.0, %v97_v25  ;;  %v102_v35 = vmul.f32 2.0, %v70_v27  ;;  %p549_p12 = pnand %p548_p11, %p542_p8 }
  0x1b   :  { %v451_v34 = vadd.f32 -1.0, %v98_v26  ;;  %v452_v36 = vadd.f32 -1.0, %v99_v28  ;;  %v453_v37 = vadd.f32 -1.0, %v100_v29  ;;  %v103_v39 = vmul.f32 2.0, %v71_v31 }
  0x1c   :  { %v454_v38 = vadd.f32 -1.0, %v101_v30  ;;  %v160_v40 = vadd.f32 4.0, %v449_v32  ;;  %v161_v41 = vadd.f32 4.0, %v450_v33  ;;  %v455_v43 = vadd.f32 -1.0, %v102_v35 }
  0x1d   :  { %v162_v42 = vadd.f32 4.0, %v451_v34  ;;  %v163_v44 = vadd.f32 4.0, %v452_v36  ;;  %v164_v45 = vadd.f32 4.0, %v453_v37  ;;  %v456_v47 = vadd.f32 -1.0, %v103_v39 }
  0x1e   :  { %v165_v46 = vadd.f32 4.0, %v454_v38  ;;  %v192_v48 = vmax.f32 %v160_v40, 0.0  ;;  %v193_v49 = vmax.f32 %v161_v41, 0.0  ;;  %v166_v51 = vadd.f32 4.0, %v455_v43 }
  0x1f   :  { %v194_v50 = vmax.f32 %v162_v42, 0.0  ;;  %v195_v52 = vmax.f32 %v163_v44, 0.0  ;;  %v196_v53 = vmax.f32 %v164_v45, 0.0  ;;  %v167_v55 = vadd.f32 4.0, %v456_v47 }
  0x20   :  { %v197_v54 = vmax.f32 %v165_v46, 0.0  ;;  %v224_v56 = vmin.f32 %v192_v48, 7.0  ;;  %v225_v57 = vmin.f32 %v193_v49, 7.0  ;;  %v198_v59 = vmax.f32 %v166_v51, 0.0 }
  0x21   :  { %v226_v58 = vmin.f32 %v194_v50, 7.0  ;;  %v227_v60 = vmin.f32 %v195_v52, 7.0  ;;  %v228_v61 = vmin.f32 %v196_v53, 7.0  ;;  %v199_v63 = vmax.f32 %v167_v55, 0.0 }
  0x22   :  { %v229_v62 = vmin.f32 %v197_v54, 7.0  ;;  %vm256_vm0 = vcmp.lt.f32.partialorder %v224_v56, 4.0  ;;  %384 = vst [vmem:[#allocation6] sm:$0xff] %v224_v56  ;;  %vm257_vm1 = vcmp.lt.f32.partialorder %v225_v57, 4.0  ;;  %385 = vst [vmem:[#allocation6 + $0x8] sm:$0xff] %v225_v57  ;;  %v230_v3 = vmin.f32 %v198_v59, 7.0 }
  0x23   :  { %vm258_vm2 = vcmp.lt.f32.partialorder %v226_v58, 4.0  ;;  %386 = vst [vmem:[#allocation6 + $0x10] sm:$0xff] %v226_v58  ;;  %v592_v4 = vmov 0.0   ;;  %vm259_vm3 = vcmp.lt.f32.partialorder %v227_v60, 4.0  ;;  %387 = vst [vmem:[#allocation6 + $0x18] sm:$0xff] %v227_v60  ;;  %vm260_vm4 = vcmp.lt.f32.partialorder %v228_v61, 4.0 }
  0x24   :  { %v481_v5 = vsel %vm256_vm0, 1.0, %v592_v4  ;;  %v482_v10 = vsel %vm257_vm1, 1.0, %v592_v4  ;;  %v483_v11 = vsel %vm258_vm2, 1.0, %v592_v4  ;;  %388 = vst [vmem:[#allocation6 + $0x20] sm:$0xff] %v228_v61  ;;  %389 = vst [vmem:[#allocation6 + $0x28] sm:$0xff] %v229_v62  ;;  %v484_v12 = vsel %vm259_vm3, 1.0, %v592_v4 }
  0x25   :  { %352 = vst [vmem:[#allocation5] sm:$0xff] %v481_v5  ;;  %353 = vst [vmem:[#allocation5 + $0x8] sm:$0xff] %v482_v10  ;;  %vm261_vm5 = vcmp.lt.f32.partialorder %v229_v62, 4.0  ;;  %vm262_vm6 = vcmp.lt.f32.partialorder %v230_v3, 4.0  ;;  %v485_v16 = vsel %vm260_vm4, 1.0, %v592_v4  ;;  %v231_v19 = vmin.f32 %v199_v63, 7.0 }
  0x26   :  { %354 = vst [vmem:[#allocation5 + $0x10] sm:$0xff] %v483_v11  ;;  %390 = vst [vmem:[#allocation6 + $0x30] sm:$0xff] %v230_v3  ;;  %v486_v17 = vsel %vm261_vm5, 1.0, %v592_v4  ;;  %v487_v18 = vsel %vm262_vm6, 1.0, %v592_v4  ;;  %v72_v20 = vcvt.s32.f32 %v40_v9  ;;  %v73_v21 = vcvt.s32.f32 %v41_v15 }
  0x27   :  { %355 = vst [vmem:[#allocation5 + $0x18] sm:$0xff] %v484_v12  ;;  %356 = vst [vmem:[#allocation5 + $0x20] sm:$0xff] %v485_v16  ;;  %v42_v22 = vunpack.c.1.s8 %v628_v2  ;;  %v43_v23 = vunpack.c.1.s8 %v633_v6  ;;  %vm263_vm7 = vcmp.lt.f32.partialorder %v231_v19, 4.0  ;;  %v44_v24 = vunpack.c.1.s8 %v635_v7 }
  0x28   :  { %357 = vst [vmem:[#allocation5 + $0x28] sm:$0xff] %v486_v17  ;;  %358 = vst [vmem:[#allocation5 + $0x30] sm:$0xff] %v487_v18  ;;  %v45_v25 = vunpack.c.1.s8 %v637_v8  ;;  %v46_v26 = vunpack.c.1.s8 %v643_v13  ;;  %v488_v27 = vsel %vm263_vm7, 1.0, %v592_v4  ;;  %v104_v28 = vmul.f32 2.0, %v72_v20 }
  0x29   :  { %391 = vst [vmem:[#allocation6 + $0x38] sm:$0xff] %v231_v19  ;;  %v105_v29 = vmul.f32 2.0, %v73_v21  ;;  %v74_v9 = vcvt.s32.f32 %v42_v22  ;;  %359 = vst [vmem:[#allocation5 + $0x38] sm:$0xff] %v488_v27  ;;  %v75_v30 = vcvt.s32.f32 %v43_v23  ;;  %v76_v15 = vcvt.s32.f32 %v44_v24 }
  0x2a   :  { %v77_v31 = vcvt.s32.f32 %v45_v25  ;;  %v78_v32 = vcvt.s32.f32 %v46_v26  ;;  %v457_v33 = vadd.f32 -1.0, %v104_v28  ;;  %v47_v36 = vunpack.c.1.s8 %v645_v14 }
  0x2b   :  { %v458_v34 = vadd.f32 -1.0, %v105_v29  ;;  %v106_v35 = vmul.f32 2.0, %v74_v9  ;;  %v107_v37 = vmul.f32 2.0, %v75_v30  ;;  %v108_v38 = vmul.f32 2.0, %v76_v15 }
  0x2c   :  { %v109_v39 = vmul.f32 2.0, %v77_v31  ;;  %v110_v40 = vmul.f32 2.0, %v78_v32  ;;  %v168_v41 = vadd.f32 4.0, %v457_v33  ;;  %v79_v44 = vcvt.s32.f32 %v47_v36 }
  0x2d   :  { %v169_v42 = vadd.f32 4.0, %v458_v34  ;;  %v459_v43 = vadd.f32 -1.0, %v106_v35  ;;  %v460_v45 = vadd.f32 -1.0, %v107_v37  ;;  %v461_v46 = vadd.f32 -1.0, %v108_v38 }
  0x2e   :  { %v462_v47 = vadd.f32 -1.0, %v109_v39  ;;  %v463_v48 = vadd.f32 -1.0, %v110_v40  ;;  %v200_v49 = vmax.f32 %v168_v41, 0.0  ;;  %v111_v52 = vmul.f32 2.0, %v79_v44 }
  0x2f   :  { %v201_v50 = vmax.f32 %v169_v42, 0.0  ;;  %v170_v51 = vadd.f32 4.0, %v459_v43  ;;  %v171_v53 = vadd.f32 4.0, %v460_v45  ;;  %v172_v54 = vadd.f32 4.0, %v461_v46 }
  0x30   :  { %v173_v55 = vadd.f32 4.0, %v462_v47  ;;  %v174_v56 = vadd.f32 4.0, %v463_v48  ;;  %v232_v57 = vmin.f32 %v200_v49, 7.0  ;;  %v464_v60 = vadd.f32 -1.0, %v111_v52 }
  0x31   :  { %v233_v58 = vmin.f32 %v201_v50, 7.0  ;;  %v202_v59 = vmax.f32 %v170_v51, 0.0  ;;  %v203_v61 = vmax.f32 %v171_v53, 0.0  ;;  %v204_v62 = vmax.f32 %v172_v54, 0.0 }
  0x32   :  { %v205_v63 = vmax.f32 %v173_v55, 0.0  ;;  %v206_v3 = vmax.f32 %v174_v56, 0.0  ;;  %vm264_vm8 = vcmp.lt.f32.partialorder %v232_v57, 4.0  ;;  %392 = vst [vmem:[#allocation6 + $0x40] sm:$0xff] %v232_v57  ;;  %v175_v10 = vadd.f32 4.0, %v464_v60 }
  0x33   :  { %vm265_vm9 = vcmp.lt.f32.partialorder %v233_v58, 4.0  ;;  %393 = vst [vmem:[#allocation6 + $0x48] sm:$0xff] %v233_v58  ;;  %v234_v5 = vmin.f32 %v202_v59, 7.0  ;;  %v489_v11 = vsel %vm264_vm8, 1.0, %v592_v4  ;;  %v235_v16 = vmin.f32 %v203_v61, 7.0 }
  0x34   :  { %v490_v12 = vsel %vm265_vm9, 1.0, %v592_v4  ;;  %v236_v17 = vmin.f32 %v204_v62, 7.0  ;;  %360 = vst [vmem:[#allocation5 + $0x40] sm:$0xff] %v489_v11  ;;  %v237_v18 = vmin.f32 %v205_v63, 7.0  ;;  %v238_v19 = vmin.f32 %v206_v3, 7.0 }
  0x35   :  { %361 = vst [vmem:[#allocation5 + $0x48] sm:$0xff] %v490_v12  ;;  %vm266_vm10 = vcmp.lt.f32.partialorder %v234_v5, 4.0  ;;  %394 = vst [vmem:[#allocation6 + $0x50] sm:$0xff] %v234_v5  ;;  %v207_v20 = vmax.f32 %v175_v10, 0.0  ;;  %vm267_vm11 = vcmp.lt.f32.partialorder %v235_v16, 4.0  ;;  %v48_v22 = vunpack.c.2.s8 %v624_v0 }
  0x36   :  { %v491_v21 = vsel %vm266_vm10, 1.0, %v592_v4  ;;  %395 = vst [vmem:[#allocation6 + $0x58] sm:$0xff] %v235_v16  ;;  %vm268_vm12 = vcmp.lt.f32.partialorder %v236_v17, 4.0  ;;  %396 = vst [vmem:[#allocation6 + $0x60] sm:$0xff] %v236_v17  ;;  %v492_v23 = vsel %vm267_vm11, 1.0, %v592_v4  ;;  %vm269_vm13 = vcmp.lt.f32.partialorder %v237_v18, 4.0 }
  0x37   :  { %362 = vst [vmem:[#allocation5 + $0x50] sm:$0xff] %v491_v21  ;;  %v493_v24 = vsel %vm268_vm12, 1.0, %v592_v4  ;;  %397 = vst [vmem:[#allocation6 + $0x68] sm:$0xff] %v237_v18  ;;  %vm270_vm14 = vcmp.lt.f32.partialorder %v238_v19, 4.0  ;;  %v494_v25 = vsel %vm269_vm13, 1.0, %v592_v4  ;;  %v239_v27 = vmin.f32 %v207_v20, 7.0 }
  0x38   :  { %398 = vst [vmem:[#allocation6 + $0x70] sm:$0xff] %v238_v19  ;;  %363 = vst [vmem:[#allocation5 + $0x58] sm:$0xff] %v492_v23  ;;  %v495_v26 = vsel %vm270_vm14, 1.0, %v592_v4  ;;  %v80_v28 = vcvt.s32.f32 %v48_v22  ;;  %v49_v29 = vunpack.c.2.s8 %v626_v1  ;;  %v50_v9 = vunpack.c.2.s8 %v628_v2 }
  0x39   :  { %364 = vst [vmem:[#allocation5 + $0x60] sm:$0xff] %v493_v24  ;;  %365 = vst [vmem:[#allocation5 + $0x68] sm:$0xff] %v494_v25  ;;  %v51_v30 = vunpack.c.2.s8 %v633_v6  ;;  %v52_v15 = vunpack.c.2.s8 %v635_v7  ;;  %vm271_vm15 = vcmp.lt.f32.partialorder %v239_v27, 4.0  ;;  %v53_v32 = vunpack.c.2.s8 %v637_v8 }
  0x3a   :  { %366 = vst [vmem:[#allocation5 + $0x70] sm:$0xff] %v495_v26  ;;  %399 = vst [vmem:[#allocation6 + $0x78] sm:$0xff] %v239_v27  ;;  %v112_v31 = vmul.f32 2.0, %v80_v28  ;;  %v54_v33 = vunpack.c.2.s8 %v643_v13  ;;  %v496_v34 = vsel %vm271_vm15, 1.0, %v592_v4  ;;  %v81_v35 = vcvt.s32.f32 %v49_v29 }
  0x3b   :  { %v82_v36 = vcvt.s32.f32 %v50_v9  ;;  %v83_v37 = vcvt.s32.f32 %v51_v30  ;;  %367 = vst [vmem:[#allocation5 + $0x78] sm:$0xff] %v496_v34  ;;  %v84_v39 = vcvt.s32.f32 %v52_v15  ;;  %v85_v40 = vcvt.s32.f32 %v53_v32 }
  0x3c   :  { %v465_v38 = vadd.f32 -1.0, %v112_v31  ;;  %v86_v41 = vcvt.s32.f32 %v54_v33  ;;  %v113_v42 = vmul.f32 2.0, %v81_v35  ;;  %v55_v45 = vunpack.c.2.s8 %v645_v14 }
  0x3d   :  { %v114_v43 = vmul.f32 2.0, %v82_v36  ;;  %v115_v44 = vmul.f32 2.0, %v83_v37  ;;  %v116_v47 = vmul.f32 2.0, %v84_v39  ;;  %v117_v48 = vmul.f32 2.0, %v85_v40 }
  0x3e   :  { %v176_v46 = vadd.f32 4.0, %v465_v38  ;;  %v118_v49 = vmul.f32 2.0, %v86_v41  ;;  %v466_v50 = vadd.f32 -1.0, %v113_v42  ;;  %v87_v53 = vcvt.s32.f32 %v55_v45 }
  0x3f   :  { %v467_v51 = vadd.f32 -1.0, %v114_v43  ;;  %v468_v52 = vadd.f32 -1.0, %v115_v44  ;;  %v469_v55 = vadd.f32 -1.0, %v116_v47  ;;  %v470_v56 = vadd.f32 -1.0, %v117_v48 }
  0x40   :  { %v208_v54 = vmax.f32 %v176_v46, 0.0  ;;  %v471_v57 = vadd.f32 -1.0, %v118_v49  ;;  %v177_v58 = vadd.f32 4.0, %v466_v50  ;;  %v119_v61 = vmul.f32 2.0, %v87_v53 }
  0x41   :  { %v178_v59 = vadd.f32 4.0, %v467_v51  ;;  %v179_v60 = vadd.f32 4.0, %v468_v52  ;;  %v180_v63 = vadd.f32 4.0, %v469_v55  ;;  %v181_v3 = vadd.f32 4.0, %v470_v56 }
  0x42   :  { %v240_v62 = vmin.f32 %v208_v54, 7.0  ;;  %v182_v5 = vadd.f32 4.0, %v471_v57  ;;  %v209_v10 = vmax.f32 %v177_v58, 0.0  ;;  %v472_v16 = vadd.f32 -1.0, %v119_v61 }
  0x43   :  { %v210_v11 = vmax.f32 %v178_v59, 0.0  ;;  %v211_v12 = vmax.f32 %v179_v60, 0.0  ;;  %v212_v17 = vmax.f32 %v180_v63, 0.0  ;;  %v213_v18 = vmax.f32 %v181_v3, 0.0 }
  0x44   :  { %vm272_vm0 = vcmp.lt.f32.partialorder %v240_v62, 4.0  ;;  %400 = vst [vmem:[#allocation6 + $0x80] sm:$0xff] %v240_v62  ;;  %v214_v19 = vmax.f32 %v182_v5, 0.0  ;;  %v241_v21 = vmin.f32 %v209_v10, 7.0  ;;  %v183_v27 = vadd.f32 4.0, %v472_v16 }
  0x45   :  { %v497_v20 = vsel %vm272_vm0, 1.0, %v592_v4  ;;  %v242_v22 = vmin.f32 %v210_v11, 7.0  ;;  %v243_v23 = vmin.f32 %v211_v12, 7.0  ;;  %v244_v24 = vmin.f32 %v212_v17, 7.0 }
  0x46   :  { %368 = vst [vmem:[#allocation5 + $0x80] sm:$0xff] %v497_v20  ;;  %v245_v25 = vmin.f32 %v213_v18, 7.0  ;;  %v246_v26 = vmin.f32 %v214_v19, 7.0  ;;  %vm273_vm1 = vcmp.lt.f32.partialorder %v241_v21, 4.0  ;;  %401 = vst [vmem:[#allocation6 + $0x88] sm:$0xff] %v241_v21  ;;  %v56_v28 = vunpack.c.3.s8 %v624_v0 }
  0x47   :  { %vm274_vm2 = vcmp.lt.f32.partialorder %v242_v22, 4.0  ;;  %402 = vst [vmem:[#allocation6 + $0x90] sm:$0xff] %v242_v22  ;;  %vm275_vm3 = vcmp.lt.f32.partialorder %v243_v23, 4.0  ;;  %403 = vst [vmem:[#allocation6 + $0x98] sm:$0xff] %v243_v23  ;;  %v498_v29 = vsel %vm273_vm1, 1.0, %v592_v4  ;;  %vm276_vm4 = vcmp.lt.f32.partialorder %v244_v24, 4.0 }
  0x48   :  { %v499_v9 = vsel %vm274_vm2, 1.0, %v592_v4  ;;  %v500_v30 = vsel %vm275_vm3, 1.0, %v592_v4  ;;  %404 = vst [vmem:[#allocation6 + $0xa0] sm:$0xff] %v244_v24  ;;  %405 = vst [vmem:[#allocation6 + $0xa8] sm:$0xff] %v245_v25  ;;  %v501_v15 = vsel %vm276_vm4, 1.0, %v592_v4  ;;  %vm277_vm5 = vcmp.lt.f32.partialorder %v245_v25, 4.0 }
  0x49   :  { %406 = vst [vmem:[#allocation6 + $0xb0] sm:$0xff] %v246_v26  ;;  %369 = vst [vmem:[#allocation5 + $0x88] sm:$0xff] %v498_v29  ;;  %vm278_vm6 = vcmp.lt.f32.partialorder %v246_v26, 4.0  ;;  %v215_v31 = vmax.f32 %v183_v27, 0.0  ;;  %v502_v0 = vsel %vm277_vm5, 1.0, %v592_v4  ;;  %v88_v33 = vcvt.s32.f32 %v56_v28 }
  0x4a   :  { %370 = vst [vmem:[#allocation5 + $0x90] sm:$0xff] %v499_v9  ;;  %371 = vst [vmem:[#allocation5 + $0x98] sm:$0xff] %v500_v30  ;;  %v503_v32 = vsel %vm278_vm6, 1.0, %v592_v4  ;;  %v57_v34 = vunpack.c.3.s8 %v626_v1  ;;  %v58_v36 = vunpack.c.3.s8 %v628_v2  ;;  %v59_v37 = vunpack.c.3.s8 %v633_v6 }
  0x4b   :  { %372 = vst [vmem:[#allocation5 + $0xa0] sm:$0xff] %v501_v15  ;;  %373 = vst [vmem:[#allocation5 + $0xa8] sm:$0xff] %v502_v0  ;;  %v247_v35 = vmin.f32 %v215_v31, 7.0  ;;  %v60_v38 = vunpack.c.3.s8 %v635_v7  ;;  %v120_v39 = vmul.f32 2.0, %v88_v33  ;;  %v61_v41 = vunpack.c.3.s8 %v637_v8 }
  0x4c   :  { %374 = vst [vmem:[#allocation5 + $0xb0] sm:$0xff] %v503_v32  ;;  %v89_v40 = vcvt.s32.f32 %v57_v34  ;;  %v62_v42 = vunpack.c.3.s8 %v643_v13  ;;  %v90_v43 = vcvt.s32.f32 %v58_v36  ;;  %v91_v44 = vcvt.s32.f32 %v59_v37 }
  0x4d   :  { %vm279_vm7 = vcmp.lt.f32.partialorder %v247_v35, 4.0  ;;  %407 = vst [vmem:[#allocation6 + $0xb8] sm:$0xff] %v247_v35  ;;  %v92_v1 = vcvt.s32.f32 %v60_v38  ;;  %v473_v46 = vadd.f32 -1.0, %v120_v39  ;;  %v93_v2 = vcvt.s32.f32 %v61_v41 }
  0x4e   :  { %v504_v45 = vsel %vm279_vm7, 1.0, %v592_v4  ;;  %v121_v47 = vmul.f32 2.0, %v89_v40  ;;  %v122_v6 = vmul.f32 2.0, %v90_v43  ;;  %v123_v48 = vmul.f32 2.0, %v91_v44 }
  0x4f   :  { %375 = vst [vmem:[#allocation5 + $0xb8] sm:$0xff] %v504_v45  ;;  %v124_v7 = vmul.f32 2.0, %v92_v1  ;;  %v94_v49 = vcvt.s32.f32 %v62_v42  ;;  %v184_v50 = vadd.f32 4.0, %v473_v46  ;;  %v125_v8 = vmul.f32 2.0, %v93_v2 }
  0x50   :  { %v474_v51 = vadd.f32 -1.0, %v121_v47  ;;  %v63_v13 = vunpack.c.3.s8 %v645_v14  ;;  %v475_v52 = vadd.f32 -1.0, %v122_v6  ;;  %v476_v53 = vadd.f32 -1.0, %v123_v48 }
  0x51   :  { %v477_v54 = vadd.f32 -1.0, %v124_v7  ;;  %v126_v55 = vmul.f32 2.0, %v94_v49  ;;  %v216_v56 = vmax.f32 %v184_v50, 0.0  ;;  %v478_v58 = vadd.f32 -1.0, %v125_v8 }
  0x52   :  { %v185_v57 = vadd.f32 4.0, %v474_v51  ;;  %v95_v59 = vcvt.s32.f32 %v63_v13  ;;  %v186_v60 = vadd.f32 4.0, %v475_v52  ;;  %v187_v61 = vadd.f32 4.0, %v476_v53 }
  0x53   :  { %v188_v62 = vadd.f32 4.0, %v477_v54  ;;  %v479_v63 = vadd.f32 -1.0, %v126_v55  ;;  %v248_v3 = vmin.f32 %v216_v56, 7.0  ;;  %v189_v10 = vadd.f32 4.0, %v478_v58 }
  0x54   :  { %v217_v5 = vmax.f32 %v185_v57, 0.0  ;;  %v127_v11 = vmul.f32 2.0, %v95_v59  ;;  %v218_v12 = vmax.f32 %v186_v60, 0.0  ;;  %v219_v16 = vmax.f32 %v187_v61, 0.0 }
  0x55   :  { %v220_v17 = vmax.f32 %v188_v62, 0.0  ;;  %v190_v14 = vadd.f32 4.0, %v479_v63  ;;  %vm280_vm8 = vcmp.lt.f32.partialorder %v248_v3, 4.0  ;;  %408 = vst [vmem:[#allocation6 + $0xc0] sm:$0xff] %v248_v3  ;;  %v221_v19 = vmax.f32 %v189_v10, 0.0 }
  0x56   :  { %v249_v18 = vmin.f32 %v217_v5, 7.0  ;;  %v480_v20 = vadd.f32 -1.0, %v127_v11  ;;  %v505_v21 = vsel %vm280_vm8, 1.0, %v592_v4  ;;  %v250_v22 = vmin.f32 %v218_v12, 7.0 }
  0x57   :  { %v251_v23 = vmin.f32 %v219_v16, 7.0  ;;  %v252_v24 = vmin.f32 %v220_v17, 7.0  ;;  %376 = vst [vmem:[#allocation5 + $0xc0] sm:$0xff] %v505_v21  ;;  %v253_v25 = vmin.f32 %v221_v19, 7.0  ;;  %v222_v26 = vmax.f32 %v190_v14, 0.0 }
  0x58   :  { %vm281_vm9 = vcmp.lt.f32.partialorder %v249_v18, 4.0  ;;  %409 = vst [vmem:[#allocation6 + $0xc8] sm:$0xff] %v249_v18  ;;  %v191_v27 = vadd.f32 4.0, %v480_v20  ;;  %vm282_vm10 = vcmp.lt.f32.partialorder %v250_v22, 4.0  ;;  %410 = vst [vmem:[#allocation6 + $0xd0] sm:$0xff] %v250_v22 }
  0x59   :  { %v506_v28 = vsel %vm281_vm9, 1.0, %v592_v4  ;;  %vm283_vm11 = vcmp.lt.f32.partialorder %v251_v23, 4.0  ;;  %411 = vst [vmem:[#allocation6 + $0xd8] sm:$0xff] %v251_v23  ;;  %vm284_vm12 = vcmp.lt.f32.partialorder %v252_v24, 4.0  ;;  %412 = vst [vmem:[#allocation6 + $0xe0] sm:$0xff] %v252_v24  ;;  %v507_v29 = vsel %vm282_vm10, 1.0, %v592_v4 }
  0x5a   :  { %377 = vst [vmem:[#allocation5 + $0xc8] sm:$0xff] %v506_v28  ;;  %v508_v9 = vsel %vm283_vm11, 1.0, %v592_v4  ;;  %v509_v30 = vsel %vm284_vm12, 1.0, %v592_v4  ;;  %vm285_vm13 = vcmp.lt.f32.partialorder %v253_v25, 4.0  ;;  %413 = vst [vmem:[#allocation6 + $0xe8] sm:$0xff] %v253_v25  ;;  %v254_v31 = vmin.f32 %v222_v26, 7.0 }
  0x5b   :  { %378 = vst [vmem:[#allocation5 + $0xd0] sm:$0xff] %v507_v29  ;;  %379 = vst [vmem:[#allocation5 + $0xd8] sm:$0xff] %v508_v9  ;;  %v510_v15 = vsel %vm285_vm13, 1.0, %v592_v4  ;;  %v223_v0 = vmax.f32 %v191_v27, 0.0 }
  0x5c   :  { %380 = vst [vmem:[#allocation5 + $0xe0] sm:$0xff] %v509_v30  ;;  %381 = vst [vmem:[#allocation5 + $0xe8] sm:$0xff] %v510_v15  ;;  %vm286_vm14 = vcmp.lt.f32.partialorder %v254_v31, 4.0 }
  0x5d   :  { %414 = vst [vmem:[#allocation6 + $0xf0] sm:$0xff] %v254_v31  ;;  %v255_v32 = vmin.f32 %v223_v0, 7.0  ;;  %v511_v33 = vsel %vm286_vm14, 1.0, %v592_v4 }
  0x5e   :  { %382 = vst [vmem:[#allocation5 + $0xf0] sm:$0xff] %v511_v33 }
  0x5f   :  { %vm287_vm15 = vcmp.lt.f32.partialorder %v255_v32, 4.0  ;;  %415 = vst [vmem:[#allocation6 + $0xf8] sm:$0xff] %v255_v32 }
  0x60   :  { %v512_v34 = vsel %vm287_vm15, 1.0, %v592_v4 }
  0x61   :  { %552 = shalt.err (!%p549_p12)
}
  0x62   :  { %s553_s27 = scalar_lea.hbm %s741_s2, 4096 }
  0x63   :  { %p554_p13 = scmp.ne.s32.totalorder %s741_s2, %s553_s27  ;;  %p557_p0 = scmp.lt.u32.totalorder %s553_s27, %s741_s2 }
  0x65   :  { %p559_p1 = pnand %p557_p0, %p554_p13 }
  0x67   :  { %562 = shalt.err (!%p559_p1)
}
  0x68   :  { %s595_s4 = smov 1024   ;;  %s596_s5 = smov 64   ;;  %383 = vst [vmem:[#allocation5 + $0xf8] sm:$0xff] %v512_v34 }
  0x69   :  { %439 = dma.vmem_to_hbm [thread:$0]  %s434_s21, 4096, %s741_s2, [#allocation7], %s595_s4, %s595_s4, %s596_s5  }
  0x6a   :  { %s563_s8 = scalar_lea.vmem %s707_s23, 4096  ;;  %p568_p3 = scmp.lt.s32.totalorder %s707_s23, %s707_s23 }
  0x6b   :  { %p564_p2 = scmp.ne.s32.totalorder %s707_s23, %s563_s8  ;;  %p569_p4 = scmp.lt.s32.totalorder %s563_s8, %s563_s8 }
  0x6d   :  { %p570_p5 = por %p569_p4, %p568_p3 }
  0x6f   :  { %p571_p6 = pnand %p570_p5, %p564_p2 }
  0x71   :  { %574 = shalt.err (!%p571_p6)
}
  0x72   :  { %s575_s11 = scalar_lea.hbm %s740_s1, 4096 }
  0x73   :  { %p576_p7 = scmp.ne.s32.totalorder %s740_s1, %s575_s11  ;;  %p579_p8 = scmp.lt.u32.totalorder %s575_s11, %s740_s1 }
  0x75   :  { %p581_p9 = pnand %p579_p8, %p576_p7 }
  0x77   :  { %584 = shalt.err (!%p581_p9)
}
  0x78   :  { %427 = dma.vmem_to_hbm [thread:$0]  %s707_s23, 4096, %s740_s1, [#allocation4], %s595_s4, %s595_s4, %s596_s5  }
  0x79   :  { %587 = dma.done.wait [#allocation4], 4096  }
  0x7a   :  { %588 = vsyncadd [#allocation4], 4294963200 }
  0x7b   :  { %589 = dma.done.wait [#allocation7], 4096  }
  0x7c   :  { %590 = vsyncadd [#allocation7], 4294963200 }
  0x7d   :  { %446 = vsyncpa [#allocation3], 1 }
  0x7e   :  { %447 = vsyncpa [#allocation4], 1 }
  0x7f   :  { %448 = vsyncpa [#allocation7], 1 }

</bundles_post_ra>
